<compile_context>
chip_gen: v5e
topology: v5e:2x2
jax: 0.10.0
libtpu: 0.0.40
codegen_flags: <defaults>
</compile_context>

<pallas_src>
import jax
import jax.numpy as jnp
from jax.experimental import pallas as pl
from jax.experimental.pallas import tpu as pltpu


def _round_up(x, m):
    return (x + m - 1) // m * m


def _device_vmem_bytes():
    # Narrow query-only fallback (does not guard the kernel launch).
    try:
        return int(pltpu.get_tpu_info().vmem_capacity_bytes)
    except Exception:
        return 64 * 1024 * 1024  # conservative: v7x per-TensorCore VMEM


def _mlp_kernel(x_ref, w1_ref, b1_ref, w2_ref, b2_ref, out_ref, h_ref):
    # x_ref:  (TB, L)   input row tile
    # w1_ref: (L, H)    full first-layer weight (resident, single-buffered)
    # b1_ref: (1, H)
    # w2_ref: (H, TV)   one contiguous vocab slab of the second-layer weight
    # b2_ref: (1, TV)
    # out_ref:(TB, TV)  lane-dense logits tile
    # h_ref:  (TB, H)   hidden-activation scratch in the MXU compute dtype
    j = pl.program_id(2)  # vocab-tile index within this core's range

    @pl.when(j == 0)
    def _():
        # First layer once per (core, batch tile): f32 accumulate, bias +
        # LeakyReLU in f32, then a single cast into the compute-dtype scratch.
        h = jnp.dot(x_ref[...].astype(w1_ref.dtype), w1_ref[...],
                    preferred_element_type=jnp.float32)
        h = h + b1_ref[...].astype(jnp.float32)
        h = jnp.maximum(h, 0.01 * h)          # LeakyReLU, negative_slope=0.01
        h_ref[...] = h.astype(h_ref.dtype)

    logits = jnp.dot(h_ref[...], w2_ref[...], preferred_element_type=jnp.float32)
    logits = logits + b2_ref[...].astype(jnp.float32)
    out_ref[...] = logits.astype(out_ref.dtype)


def prepare_params(w1, b1, w2, b2, *, compute_dtype=jnp.bfloat16, tv=None):
    """One-time weight preparation (cast / pad / re-tile). Do NOT call per step.

    w1: (latent, hidden), b1: (hidden,) or (1, hidden),
    w2: (hidden, vocab),  b2: (vocab,)  or (1, vocab)
    (weights stored (in, out), i.e. transposed vs. PyTorch's (out, in)).
    """
    L, H = w1.shape
    assert w2.shape[0] == H
    V = w2.shape[1]
    cd = jnp.dtype(compute_dtype)
    w_isz = cd.itemsize

    b1 = jnp.asarray(b1).reshape(1, H)
    b2 = jnp.asarray(b2).reshape(1, V)

    if tv is None:
        # Target ~4 MiB W2 slab per pipeline buffer: big enough to amortize
        # per-step overhead, small enough to keep 2 buffers well inside VMEM.
        target = 4 * 1024 * 1024
        tv = max(512, min(8192, _round_up(max(1, target // (H * w_isz)), 128)))
    tv = _round_up(tv, 128)
    tv = min(tv, _round_up(V, 128))

    Vp = _round_up(V, tv)
    nv = Vp // tv

    w2c = w2.astype(cd)
    if Vp != V:
        w2c = jnp.pad(w2c, ((0, 0), (0, Vp - V)))
        b2p = jnp.pad(b2, ((0, 0), (0, Vp - V)))
    else:
        b2p = b2
    # (H, Vp) -> (nv, H, tv): each vocab tile is one contiguous HBM slab.
    w2_tiles = jnp.transpose(w2c.reshape(H, nv, tv), (1, 0, 2))

    return {
        "w1": w1.astype(cd),
        "b1": b1,
        "w2_tiles": w2_tiles,
        "b2": b2p,
        "vocab_size": V,
        "tv": tv,
        "compute_dtype": cd,
    }


def next_word_prediction_cap(x, params, *, tb=512):
    """Forward pass: x (B, latent) -> logits (B, vocab) in x.dtype."""
    w1, b1 = params["w1"], params["b1"]
    w2_tiles, b2 = params["w2_tiles"], params["b2"]
    V, tv, cd = params["vocab_size"], params["tv"], params["compute_dtype"]

    B, L = x.shape
    H = w1.shape[1]
    nv = w2_tiles.shape[0]
    Vp = nv * tv
    out_dtype = x.dtype

    x_isz = jnp.dtype(x.dtype).itemsize
    w_isz = jnp.dtype(cd).itemsize
    out_isz = jnp.dtype(out_dtype).itemsize
    b_isz = 4

    single_buf_w1 = hasattr(pl, "Buffered")
    w1_bufs = 1 if single_buf_w1 else 2

    vmem_cap = _device_vmem_bytes()

    def vmem_need(tb_):
        need = 2 * tb_ * L * x_isz                       # x tile (double-buffered)
        need += w1_bufs * (L * H * w_isz + H * b_isz)    # W1 + b1 (resident)
        need += 2 * (H * tv * w_isz + tv * b_isz)        # W2 slab + b2 tile
        need += 2 * tb_ * tv * out_isz                   # output tile
        need += tb_ * H * w_isz                          # hidden scratch
        return need

    # --- batch tiling: balance tiles to minimize padded rows, fit VMEM ------
    nb0 = -(-B // tb)
    tb_eff = _round_up(-(-B // nb0), 8)
    while vmem_need(tb_eff) > int(0.9 * vmem_cap) and tb_eff > 8:
        tb_eff = max(8, _round_up(tb_eff // 2, 8))
    Bp = _round_up(B, tb_eff)
    nb = Bp // tb_eff
    x_p = x if Bp == B else jnp.pad(x, ((0, Bp - B), (0, 0)))

    # --- split vocab tiles across TensorCores when batch tiles can't --------
    nc = 2 if (nb < 2 and nv >= 2 and nv % 2 == 0) else 1
    nvj = nv // nc
    grid = (nc, nb, nvj)

    if single_buf_w1:
        w1_spec = pl.BlockSpec((L, H), lambda c, i, j: (0, 0),
                               pipeline_mode=pl.Buffered(1))
        b1_spec = pl.BlockSpec((1, H), lambda c, i, j: (0, 0),
                               pipeline_mode=pl.Buffered(1))
    else:
        w1_spec = pl.BlockSpec((L, H), lambda c, i, j: (0, 0))
        b1_spec = pl.BlockSpec((1, H), lambda c, i, j: (0, 0))

    in_specs = [
        pl.BlockSpec((tb_eff, L), lambda c, i, j: (i, 0)),                   # x
        w1_spec,                                                             # W1
        b1_spec,                                                             # b1
        pl.BlockSpec((None, H, tv), lambda c, i, j: (c * nvj + j, 0, 0)),    # W2 slab
        pl.BlockSpec((1, tv), lambda c, i, j: (0, c * nvj + j)),             # b2
    ]
    out_spec = pl.BlockSpec((tb_eff, tv), lambda c, i, j: (i, c * nvj + j))

    need = vmem_need(tb_eff)
    vmem_limit = min(int(0.9 * vmem_cap), max(32 * 1024 * 1024, int(1.25 * need)))

    cost = pl.CostEstimate(
        flops=2 * Bp * L * H * nc + 2 * Bp * H * Vp,
        transcendentals=0,
        bytes_accessed=(Bp * L * x_isz                 # inputs
                        + L * H * w_isz + H * b_isz    # W1 / b1 (fetched once)
                        + nb * H * Vp * w_isz          # W2 re-streamed per batch tile
                        + nb * Vp * b_isz              # b2
                        + Bp * Vp * out_isz),          # logits
    )

    out_p = pl.pallas_call(
        _mlp_kernel,
        out_shape=jax.ShapeDtypeStruct((Bp, Vp), out_dtype),
        grid=grid,
        in_specs=in_specs,
        out_specs=out_spec,
        scratch_shapes=[pltpu.VMEM((tb_eff, H), cd)],
        compiler_params=pltpu.CompilerParams(
            # Vocab-split and batch axes may shard across TensorCores; the
            # hidden scratch is re-initialized at each core's first local vocab
            # tile (program_id(2) == 0), so either split is safe.  The inner
            # vocab axis stays sequential (scratch reuse).
            dimension_semantics=("parallel", "parallel", "arbitrary"),
            vmem_limit_bytes=vmem_limit,
        ),
        cost_estimate=cost,
    )(x_p, w1, b1, w2_tiles, b2)

    return out_p[:B, :V]


def init_params(key, latent_size, hidden_size, vocab_size, dtype=jnp.float32):
    """Deterministic init mimicking PyTorch nn.Linear default (uniform +-1/sqrt(fan_in))."""
    k1, k2, k3, k4 = jax.random.split(key, 4)
    bound1 = 1.0 / (latent_size ** 0.5)
    bound2 = 1.0 / (hidden_size ** 0.5)
    # stored as (in, out), i.e. transpose of PyTorch's (out, in)
    w1 = jax.random.uniform(k1, (latent_size, hidden_size), dtype, -bound1, bound1)
    b1 = jax.random.uniform(k2, (hidden_size,), dtype, -bound1, bound1)
    w2 = jax.random.uniform(k3, (hidden_size, vocab_size), dtype, -bound2, bound2)
    b2 = jax.random.uniform(k4, (vocab_size,), dtype, -bound2, bound2)
    return w1, b1, w2, b2


def reference_forward(x, w1, b1, w2, b2, compute_dtype=None):
    cd = jnp.dtype(compute_dtype) if compute_dtype is not None else jnp.dtype(x.dtype)
    h = jnp.dot(x.astype(cd), w1.astype(cd), preferred_element_type=jnp.float32)
    h = h + b1.reshape(1, -1).astype(jnp.float32)
    h = jnp.maximum(h, 0.01 * h)
    h = h.astype(cd)
    out = jnp.dot(h, w2.astype(cd), preferred_element_type=jnp.float32)
    out = out + b2.reshape(1, -1).astype(jnp.float32)
    return out.astype(x.dtype)


if __name__ == "__main__":
    # Small shapes consistent with the module (latent -> hidden -> vocab MLP).
    B, LATENT, HIDDEN, VOCAB = 16, 128, 256, 512

    key = jax.random.PRNGKey(0)
    kx, kp = jax.random.split(key)
    x = jax.random.normal(kx, (B, LATENT), jnp.float32)
    w1, b1, w2, b2 = init_params(kp, LATENT, HIDDEN, VOCAB)

    ref_f32 = reference_forward(x, w1, b1, w2, b2)

    # 1) f32 path, auto vocab tile (single vocab tile here).
    p_f32 = prepare_params(w1, b1, w2, b2, compute_dtype=jnp.float32)
    out = jax.block_until_ready(next_word_prediction_cap(x, p_f32))
    assert out.shape == (B, VOCAB)
    assert jnp.allclose(out, ref_f32, atol=2e-4, rtol=2e-4), "mismatch (f32, single tile)"

    # 2) f32 path, forced small vocab tile -> 4 tiles, 1 batch tile -> the
    #    vocab-split grid (2, 1, 2): exercises per-core hidden re-init guard.
    p_f32_t = prepare_params(w1, b1, w2, b2, compute_dtype=jnp.float32, tv=128)
    out_t = jax.block_until_ready(next_word_prediction_cap(x, p_f32_t))
    assert jnp.allclose(out_t, ref_f32, atol=2e-4, rtol=2e-4), "mismatch (f32, tiled/split)"

    # 3) bf16 weight + hidden-activation path (f32 accumulation on the MXU).
    p_bf16 = prepare_params(w1, b1, w2, b2, compute_dtype=jnp.bfloat16, tv=256)
    ref_bf16 = reference_forward(x, w1, b1, w2, b2, compute_dtype=jnp.bfloat16)
    out_b = jax.block_until_ready(next_word_prediction_cap(x, p_bf16))
    assert out_b.shape == (B, VOCAB)
    assert jnp.allclose(out_b, ref_bf16, atol=2e-2, rtol=2e-2), "mismatch (bf16)"

    # 4) batch not a multiple of 8: padded-row path (plus tiled/split vocab).
    out_odd = jax.block_until_ready(next_word_prediction_cap(x[:5], p_f32_t))
    assert out_odd.shape == (5, VOCAB)
    assert jnp.allclose(out_odd, ref_f32[:5], atol=2e-4, rtol=2e-4), "mismatch (padded batch)"

    print("KERNEL_OK")
</pallas_src>

<mosaic_0001>
module attributes {stable_mosaic.version = 11 : i64} {
  func.func @_mlp_kernel(%arg0: i32, %arg1: i32, %arg2: i32, %arg3: memref<16x128xf32, #tpu.memory_space<vmem>>, %arg4: memref<128x256xf32, #tpu.memory_space<vmem>>, %arg5: memref<1x256xf32, #tpu.memory_space<vmem>>, %arg6: memref<1x256x512xf32, #tpu.memory_space<vmem>>, %arg7: memref<1x512xf32, #tpu.memory_space<vmem>>, %arg8: memref<16x512xf32, #tpu.memory_space<vmem>>, %arg9: memref<16x256xf32, #tpu.memory_space<vmem>>) attributes {dimension_semantics = [#tpu.dimension_semantics<parallel>, #tpu.dimension_semantics<parallel>, #tpu.dimension_semantics<arbitrary>], iteration_bounds = array<i64: 1, 1, 1>, scalar_prefetch = 0 : i64, scratch_operands = 1 : i64, tpu.core_type = #tpu.core_type<tc>, window_params = [{transform_indices = @transform_0, window_bounds = array<i64: 16, 128>}, {pipeline_mode = #tpu.pipeline_mode<synchronous>, transform_indices = @transform_1, window_bounds = array<i64: 128, 256>}, {pipeline_mode = #tpu.pipeline_mode<synchronous>, transform_indices = @transform_2, window_bounds = array<i64: 1, 256>}, {transform_indices = @transform_3, window_bounds = array<i64: 1, 256, 512>}, {transform_indices = @transform_4, window_bounds = array<i64: 1, 512>}, {transform_indices = @transform_5, window_bounds = array<i64: 16, 512>}]} {
    %c0_i32 = arith.constant 0 : i32
    %0 = arith.cmpi eq, %arg2, %c0_i32 : i32
    %1 = arith.extui %0 : i1 to i32
    %c0_i32_0 = arith.constant 0 : i32
    %2 = arith.cmpi ne, %1, %c0_i32_0 : i32
    scf.if %2 {
      %c0_9 = arith.constant 0 : index
      %c0_10 = arith.constant 0 : index
      %11 = vector.load %arg3[%c0_9, %c0_10] : memref<16x128xf32, #tpu.memory_space<vmem>>, vector<16x128xf32>
      %c0_11 = arith.constant 0 : index
      %c0_12 = arith.constant 0 : index
      %12 = vector.load %arg4[%c0_11, %c0_12] : memref<128x256xf32, #tpu.memory_space<vmem>>, vector<128x256xf32>
      %cst_13 = arith.constant dense<0.000000e+00> : vector<16x256xf32>
      %13 = tpu.matmul %11, %12, %cst_13 {dimension_numbers = #tpu.dot_dimension_numbers<[1], [0], [0], [1], [0, 0, 1, 1], [], []>} : vector<16x128xf32>, vector<128x256xf32>, vector<16x256xf32> -> vector<16x256xf32>
      %c0_14 = arith.constant 0 : index
      %c0_15 = arith.constant 0 : index
      %14 = vector.load %arg5[%c0_14, %c0_15] : memref<1x256xf32, #tpu.memory_space<vmem>>, vector<1x256xf32>
      %15 = vector.broadcast %14 : vector<1x256xf32> to vector<16x256xf32>
      %16 = arith.addf %13, %15 : vector<16x256xf32>
      %cst_16 = arith.constant 0.00999999977 : f32
      %17 = vector.broadcast %cst_16 : f32 to vector<16x256xf32>
      %18 = arith.mulf %17, %16 : vector<16x256xf32>
      %19 = arith.maximumf %16, %18 : vector<16x256xf32>
      %c0_17 = arith.constant 0 : index
      %c0_18 = arith.constant 0 : index
      %20 = vector.load %arg9[%c0_17, %c0_18] : memref<16x256xf32, #tpu.memory_space<vmem>>, vector<16x256xf32>
      tpu.vector_store %arg9[%c0_17, %c0_18], %19 {strides = array<i32>} : memref<16x256xf32, #tpu.memory_space<vmem>>, vector<16x256xf32>,
    } else {
    }
    %c0 = arith.constant 0 : index
    %c0_1 = arith.constant 0 : index
    %3 = vector.load %arg9[%c0, %c0_1] : memref<16x256xf32, #tpu.memory_space<vmem>>, vector<16x256xf32>
    %c0_2 = arith.constant 0 : index
    %c0_3 = arith.constant 0 : index
    %c0_4 = arith.constant 0 : index
    %4 = vector.load %arg6[%c0_2, %c0_3, %c0_4] : memref<1x256x512xf32, #tpu.memory_space<vmem>>, vector<1x256x512xf32>
    %5 = vector.shape_cast %4 : vector<1x256x512xf32> to vector<256x512xf32>
    %cst = arith.constant dense<0.000000e+00> : vector<16x512xf32>
    %6 = tpu.matmul %3, %5, %cst {dimension_numbers = #tpu.dot_dimension_numbers<[1], [0], [0], [1], [0, 0, 1, 1], [], []>} : vector<16x256xf32>, vector<256x512xf32>, vector<16x512xf32> -> vector<16x512xf32>
    %c0_5 = arith.constant 0 : index
    %c0_6 = arith.constant 0 : index
    %7 = vector.load %arg7[%c0_5, %c0_6] : memref<1x512xf32, #tpu.memory_space<vmem>>, vector<1x512xf32>
    %8 = vector.broadcast %7 : vector<1x512xf32> to vector<16x512xf32>
    %9 = arith.addf %6, %8 : vector<16x512xf32>
    %c0_7 = arith.constant 0 : index
    %c0_8 = arith.constant 0 : index
    %10 = vector.load %arg8[%c0_7, %c0_8] : memref<16x512xf32, #tpu.memory_space<vmem>>, vector<16x512xf32>
    tpu.vector_store %arg8[%c0_7, %c0_8], %9 {strides = array<i32>} : memref<16x512xf32, #tpu.memory_space<vmem>>, vector<16x512xf32>,
    return
  }
  func.func @transform_0(%arg0: i32, %arg1: i32, %arg2: i32) -> (i32, i32) {
    %c0_i32 = arith.constant 0 : i32
    %c0_i32_0 = arith.constant 0 : i32
    return %arg1, %c0_i32 : i32, i32
  }
  func.func @transform_1(%arg0: i32, %arg1: i32, %arg2: i32) -> (i32, i32) {
    %c0_i32 = arith.constant 0 : i32
    %c0_i32_0 = arith.constant 0 : i32
    %c0_i32_1 = arith.constant 0 : i32
    return %c0_i32, %c0_i32_0 : i32, i32
  }
  func.func @transform_2(%arg0: i32, %arg1: i32, %arg2: i32) -> (i32, i32) {
    %c0_i32 = arith.constant 0 : i32
    %c0_i32_0 = arith.constant 0 : i32
    %c0_i32_1 = arith.constant 0 : i32
    return %c0_i32, %c0_i32_0 : i32, i32
  }
  func.func @transform_3(%arg0: i32, %arg1: i32, %arg2: i32) -> (i32, i32, i32) {
    %c1_i32 = arith.constant 1 : i32
    %0 = arith.muli %arg0, %c1_i32 : i32
    %1 = arith.addi %0, %arg2 : i32
    %c0_i32 = arith.constant 0 : i32
    %c0_i32_0 = arith.constant 0 : i32
    %c0_i32_1 = arith.constant 0 : i32
    return %1, %c0_i32, %c0_i32_0 : i32, i32, i32
  }
  func.func @transform_4(%arg0: i32, %arg1: i32, %arg2: i32) -> (i32, i32) {
    %c1_i32 = arith.constant 1 : i32
    %0 = arith.muli %arg0, %c1_i32 : i32
    %1 = arith.addi %0, %arg2 : i32
    %c0_i32 = arith.constant 0 : i32
    %c0_i32_0 = arith.constant 0 : i32
    return %c0_i32, %1 : i32, i32
  }
  func.func @transform_5(%arg0: i32, %arg1: i32, %arg2: i32) -> (i32, i32) {
    %c1_i32 = arith.constant 1 : i32
    %0 = arith.muli %arg0, %c1_i32 : i32
    %1 = arith.addi %0, %arg2 : i32
    %c0_i32 = arith.constant 0 : i32
    return %arg1, %1 : i32, i32
  }
}

</mosaic_0001>

<bundles_post_ra>
// kernel: tpu_custom_call.1
= control target key start
LH: loop header
LB: loop body
LE: loop exit
PB: predicated region body
PF: predicated region fallthrough
CT: control target
= control target key end

     0   :  { %10 = vsyncpa [#allocation4], 0  ;;  %s958_s0 = inlined_call_operand.hbm [shape: f32[16,128], index: 0, kind: input, shape index: {}]   ;;  %s959_s1 = inlined_call_operand.hbm [shape: f32[128,256], index: 1, kind: input, shape index: {}]   ;;  %s960_s2 = inlined_call_operand.hbm [shape: f32[1,256], index: 2, kind: input, shape index: {}]   ;;  %s961_s3 = inlined_call_operand.hbm [shape: f32[1,256,512], index: 3, kind: input, shape index: {}]   ;;  %s962_s4 = inlined_call_operand.hbm [shape: f32[1,512], index: 4, kind: input, shape index: {}]   ;;  %s963_s5 = inlined_call_operand.hbm [shape: f32[16,512], index: 5, kind: output, shape index: {}]  }
   0x1   :  { %11 = vsyncpa [#allocation7], 0 }
   0x2   :  { %12 = vsyncpa [#allocation10], 0  ;;  %s31_s20 = sshll.u32 %s959_s1, 4  ;;  %s32_s20 = int_to_ptr.hbm [resolvable:$true] %s31_s20 }
   0x3   :  { %13 = vsyncpa [#allocation5], 0  ;;  %s764_s21 = smov [#allocation6]   ;;  %s59_s25 = sshll.u32 %s961_s3, 4  ;;  %s60_s25 = int_to_ptr.hbm [resolvable:$true] %s59_s25 }
   0x4   :  { %s33_s22 = sshll.u32 %s764_s21, 4  ;;  %s765_s26 = smov 256   ;;  %s34_s22 = int_to_ptr.vmem [resolvable:$true] %s33_s22 }
   0x5   :  { %s766_s27 = smov 16   ;;  %s767_s28 = smov [#allocation9]  }
   0x6   :  { %39 = dma.hbm_to_vmem [thread:$0]  %s32_s20, 4096, %s34_s22, [#allocation7], %s765_s26, %s765_s26, %s766_s27  }
   0x7   :  { %s61_s29 = sshll.u32 %s767_s28, 4  ;;  %s768_s30 = smov 512   ;;  %s62_s29 = int_to_ptr.vmem [resolvable:$true] %s61_s29 }
   0x8   :  { %s769_s6 = smov 32   ;;  %s18_s8 = sshll.u32 %s958_s0, 4  ;;  %s19_s8 = int_to_ptr.hbm [resolvable:$true] %s18_s8 }
   0x9   :  { %67 = dma.hbm_to_vmem [thread:$0]  %s60_s25, 16384, %s62_s29, [#allocation10], %s768_s30, %s768_s30, %s769_s6  }
   0xa   :  { %s770_s9 = smov [#allocation3]   ;;  %s45_s12 = sshll.u32 %s960_s2, 4  ;;  %s46_s12 = int_to_ptr.hbm [resolvable:$true] %s45_s12 }
   0xb   :  { %s20_s3 = sshll.u32 %s770_s9, 4  ;;  %s771_s13 = smov 128   ;;  %s21_s3 = int_to_ptr.vmem [resolvable:$true] %s20_s3 }
   0xc   :  { %s772_s14 = smov 8   ;;  %s773_s15 = smov [#allocation8]  }
   0xd   :  { %26 = dma.hbm_to_vmem [thread:$0]  %s19_s8, 256, %s21_s3, [#allocation4], %s771_s13, %s771_s13, %s772_s14  }
   0xe   :  { %s47_s16 = sshll.u32 %s773_s15, 4  ;;  %s76_s19 = sshll.u32 %s962_s4, 4  ;;  %s48_s16 = int_to_ptr.vmem [resolvable:$true] %s47_s16  ;;  %s77_s19 = int_to_ptr.hbm [resolvable:$true] %s76_s19 }
   0xf   :  { %50 = dma.hbm_to_vmem [thread:$0]  %s46_s12, 32, %s48_s16, [#allocation7]  }
  0x10   :  { %s774_s0 = smov [#allocation11]  }
  0x11   :  { %s78_s20 = sshll.u32 %s774_s0, 4  ;;  %s79_s20 = int_to_ptr.vmem [resolvable:$true] %s78_s20 }
  0x12   :  { %81 = dma.hbm_to_vmem [thread:$0]  %s77_s19, 64, %s79_s20, [#allocation10]  }
  0x13   :  { %756 = dma.done.wait [#allocation4], 256  }
  0x14   :  { %757 = vsyncadd [#allocation4], 4294967040 }
  0x15   :  { %758 = dma.done.wait [#allocation7], 4128  }
  0x16   :  { %759 = vsyncadd [#allocation7], 4294963168 }
  0x17   :  { %760 = dma.done.wait [#allocation10], 16448  }
  0x18   :  { %761 = vsyncadd [#allocation10], 4294950848  ;;  %v143_v0 = vld [vmem:[#allocation6 + $0xf0] sm:$0xff]  ;;  %v144_v1 = vld [vmem:[#allocation6 + $0xf8] sm:$0xff]  ;;  %s775_s2 = smov [#allocation12]   ;;  %s553_s23 = sshll.u32 %s963_s5, 4  ;;  %s554_s23 = int_to_ptr.hbm [resolvable:$true] %s553_s23 }
  0x19   :  { %v141_v2 = vld [vmem:[#allocation6 + $0xe0] sm:$0xff]  ;;  %151 = vmatpush.msra.mxu0 %v143_v0  ;;  %174 = vmatpush.msra.mxu1 %v144_v1  ;;  %v142_v3 = vld [vmem:[#allocation6 + $0xe8] sm:$0xff]  ;;  %v139_v4 = vld [vmem:[#allocation6 + $0xd0] sm:$0xff]  ;;  %s551_s4 = sshll.u32 %s775_s2, 4  ;;  %s552_s4 = int_to_ptr.vmem [resolvable:$true] %s551_s4 }
  0x1a   :  { %v140_v5 = vld [vmem:[#allocation6 + $0xd8] sm:$0xff]  ;;  %v137_v6 = vld [vmem:[#allocation6 + $0xc0] sm:$0xff]  ;;  %v138_v7 = vld [vmem:[#allocation6 + $0xc8] sm:$0xff] }
  0x1b   :  { %152 = vmatpush.msra.mxu0 %v141_v2  ;;  %175 = vmatpush.msra.mxu1 %v142_v3  ;;  %v135_v8 = vld [vmem:[#allocation6 + $0xb0] sm:$0xff]  ;;  %v136_v9 = vld [vmem:[#allocation6 + $0xb8] sm:$0xff]  ;;  %v133_v10 = vld [vmem:[#allocation6 + $0xa0] sm:$0xff] }
  0x1c   :  { %v134_v11 = vld [vmem:[#allocation6 + $0xa8] sm:$0xff]  ;;  %v131_v12 = vld [vmem:[#allocation6 + $0x90] sm:$0xff]  ;;  %v132_v13 = vld [vmem:[#allocation6 + $0x98] sm:$0xff] }
  0x1d   :  { %153 = vmatpush.msra.mxu0 %v139_v4  ;;  %176 = vmatpush.msra.mxu1 %v140_v5  ;;  %v129_v14 = vld [vmem:[#allocation6 + $0x80] sm:$0xff]  ;;  %v130_v17 = vld [vmem:[#allocation6 + $0x88] sm:$0xff]  ;;  %v127_v22 = vld [vmem:[#allocation6 + $0x70] sm:$0xff] }
  0x1e   :  { %v273_v15 = vld [vmem:[#allocation9 + $0x1e0] sm:$0xff]  ;;  %v128_v23 = vld [vmem:[#allocation6 + $0x78] sm:$0xff]  ;;  %v123_v30 = vld [vmem:[#allocation6 + $0x50] sm:$0xff] }
  0x1f   :  { %154 = vmatpush.msra.mxu0 %v137_v6  ;;  %177 = vmatpush.msra.mxu1 %v138_v7  ;;  %v337_v16 = vld [vmem:[#allocation9 + $0x3e0] sm:$0xff]  ;;  %v124_v31 = vld [vmem:[#allocation6 + $0x58] sm:$0xff]  ;;  %v119_v38 = vld [vmem:[#allocation6 + $0x30] sm:$0xff] }
  0x20   :  { %351 = vmatpush.msra.mxu2 %v273_v15  ;;  %374 = vmatpush.msra.mxu3 %v337_v16  ;;  %v269_v18 = vld [vmem:[#allocation9 + $0x1c0] sm:$0xff]  ;;  %v120_v39 = vld [vmem:[#allocation6 + $0x38] sm:$0xff]  ;;  %v115_v46 = vld [vmem:[#allocation6 + $0x10] sm:$0xff] }
  0x21   :  { %155 = vmatpush.msra.mxu0 %v135_v8  ;;  %178 = vmatpush.msra.mxu1 %v136_v9  ;;  %v333_v19 = vld [vmem:[#allocation9 + $0x3c0] sm:$0xff]  ;;  %v116_v47 = vld [vmem:[#allocation6 + $0x18] sm:$0xff]  ;;  %v111_v52 = vld [vmem:[#allocation3] sm:$0xff] }
  0x22   :  { %v265_v20 = vld [vmem:[#allocation9 + $0x1a0] sm:$0xff]  ;;  %352 = vmatpush.msra.mxu2 %v269_v18  ;;  %375 = vmatpush.msra.mxu3 %v333_v19  ;;  %v274_v53 = vld [vmem:[#allocation9 + $0x1e8] sm:$0xff]  ;;  %v112_v3 = vld [vmem:[#allocation3 + $0x8] sm:$0xff] }
  0x23   :  { %156 = vmatpush.msra.mxu0 %v133_v10  ;;  %179 = vmatpush.msra.mxu1 %v134_v11  ;;  %v329_v21 = vld [vmem:[#allocation9 + $0x3a0] sm:$0xff]  ;;  %v338_v54 = vld [vmem:[#allocation9 + $0x3e8] sm:$0xff]  ;;  %v275_v18 = vld [vmem:[#allocation9 + $0x1f0] sm:$0xff] }
  0x24   :  { %v261_v24 = vld [vmem:[#allocation9 + $0x180] sm:$0xff]  ;;  %353 = vmatpush.msra.mxu2 %v265_v20  ;;  %376 = vmatpush.msra.mxu3 %v329_v21  ;;  %v270_v57 = vld [vmem:[#allocation9 + $0x1c8] sm:$0xff]  ;;  %v339_v19 = vld [vmem:[#allocation9 + $0x3f0] sm:$0xff] }
  0x25   :  { %157 = vmatpush.msra.mxu0 %v131_v12  ;;  %180 = vmatpush.msra.mxu1 %v132_v13  ;;  %v325_v25 = vld [vmem:[#allocation9 + $0x380] sm:$0xff]  ;;  %v334_v58 = vld [vmem:[#allocation9 + $0x3c8] sm:$0xff] }
  0x26   :  { %v125_v26 = vld [vmem:[#allocation6 + $0x60] sm:$0xff]  ;;  %v126_v27 = vld [vmem:[#allocation6 + $0x68] sm:$0xff]  ;;  %354 = vmatpush.msra.mxu2 %v261_v24  ;;  %377 = vmatpush.msra.mxu3 %v325_v25 }
  0x27   :  { %158 = vmatpush.msra.mxu0 %v129_v14  ;;  %181 = vmatpush.msra.mxu1 %v130_v17  ;;  %v257_v28 = vld [vmem:[#allocation9 + $0x160] sm:$0xff]  ;;  %v266_v61 = vld [vmem:[#allocation9 + $0x1a8] sm:$0xff] }
  0x28   :  { %v321_v29 = vld [vmem:[#allocation9 + $0x360] sm:$0xff]  ;;  %355 = vmatpush.msra.mxu2 %v257_v28  ;;  %v330_v62 = vld [vmem:[#allocation9 + $0x3a8] sm:$0xff] }
  0x29   :  { %159 = vmatpush.msra.mxu0 %v127_v22  ;;  %182 = vmatpush.msra.mxu1 %v128_v23  ;;  %v253_v32 = vld [vmem:[#allocation9 + $0x140] sm:$0xff]  ;;  %v262_v1 = vld [vmem:[#allocation9 + $0x188] sm:$0xff]  ;;  %v271_v22 = vld [vmem:[#allocation9 + $0x1d0] sm:$0xff] }
  0x2a   :  { %v317_v33 = vld [vmem:[#allocation9 + $0x340] sm:$0xff]  ;;  %378 = vmatpush.msra.mxu3 %v321_v29  ;;  %356 = vmatpush.msra.mxu2 %v253_v32  ;;  %v326_v2 = vld [vmem:[#allocation9 + $0x388] sm:$0xff]  ;;  %v335_v23 = vld [vmem:[#allocation9 + $0x3d0] sm:$0xff] }
  0x2b   :  { %160 = vmatpush.msra.mxu0 %v125_v26  ;;  %183 = vmatpush.msra.mxu1 %v126_v27  ;;  %v121_v34 = vld [vmem:[#allocation6 + $0x40] sm:$0xff]  ;;  %v122_v35 = vld [vmem:[#allocation6 + $0x48] sm:$0xff]  ;;  %v267_v26 = vld [vmem:[#allocation9 + $0x1b0] sm:$0xff] }
  0x2c   :  { %v249_v36 = vld [vmem:[#allocation9 + $0x120] sm:$0xff]  ;;  %379 = vmatpush.msra.mxu3 %v317_v33  ;;  %v258_v4 = vld [vmem:[#allocation9 + $0x168] sm:$0xff]  ;;  %v331_v27 = vld [vmem:[#allocation9 + $0x3b0] sm:$0xff] }
  0x2d   :  { %161 = vmatpush.msra.mxu0 %v123_v30  ;;  %184 = vmatpush.msra.mxu1 %v124_v31  ;;  %v313_v37 = vld [vmem:[#allocation9 + $0x320] sm:$0xff]  ;;  %v322_v5 = vld [vmem:[#allocation9 + $0x368] sm:$0xff]  ;;  %v263_v30 = vld [vmem:[#allocation9 + $0x190] sm:$0xff] }
  0x2e   :  { %v245_v40 = vld [vmem:[#allocation9 + $0x100] sm:$0xff]  ;;  %357 = vmatpush.msra.mxu2 %v249_v36  ;;  %380 = vmatpush.msra.mxu3 %v313_v37  ;;  %v254_v8 = vld [vmem:[#allocation9 + $0x148] sm:$0xff]  ;;  %v327_v31 = vld [vmem:[#allocation9 + $0x390] sm:$0xff] }
  0x2f   :  { %162 = vmatpush.msra.mxu0 %v121_v34  ;;  %185 = vmatpush.msra.mxu1 %v122_v35  ;;  %v309_v41 = vld [vmem:[#allocation9 + $0x300] sm:$0xff]  ;;  %v318_v9 = vld [vmem:[#allocation9 + $0x348] sm:$0xff]  ;;  %v259_v34 = vld [vmem:[#allocation9 + $0x170] sm:$0xff] }
  0x30   :  { %v117_v42 = vld [vmem:[#allocation6 + $0x20] sm:$0xff]  ;;  %v118_v43 = vld [vmem:[#allocation6 + $0x28] sm:$0xff]  ;;  %358 = vmatpush.msra.mxu2 %v245_v40  ;;  %381 = vmatpush.msra.mxu3 %v309_v41  ;;  %v323_v35 = vld [vmem:[#allocation9 + $0x370] sm:$0xff] }
  0x31   :  { %163 = vmatpush.msra.mxu0 %v119_v38  ;;  %186 = vmatpush.msra.mxu1 %v120_v39  ;;  %v241_v44 = vld [vmem:[#allocation9 + $0xe0] sm:$0xff]  ;;  %v250_v12 = vld [vmem:[#allocation9 + $0x128] sm:$0xff]  ;;  %v255_v38 = vld [vmem:[#allocation9 + $0x150] sm:$0xff] }
  0x32   :  { %v305_v45 = vld [vmem:[#allocation9 + $0x2e0] sm:$0xff]  ;;  %359 = vmatpush.msra.mxu2 %v241_v44  ;;  %v314_v13 = vld [vmem:[#allocation9 + $0x328] sm:$0xff]  ;;  %v319_v39 = vld [vmem:[#allocation9 + $0x350] sm:$0xff] }
  0x33   :  { %164 = vmatpush.msra.mxu0 %v117_v42  ;;  %187 = vmatpush.msra.mxu1 %v118_v43  ;;  %v237_v48 = vld [vmem:[#allocation9 + $0xc0] sm:$0xff]  ;;  %v246_v16 = vld [vmem:[#allocation9 + $0x108] sm:$0xff]  ;;  %v251_v42 = vld [vmem:[#allocation9 + $0x130] sm:$0xff] }
  0x34   :  { %v301_v49 = vld [vmem:[#allocation9 + $0x2c0] sm:$0xff]  ;;  %382 = vmatpush.msra.mxu3 %v305_v45  ;;  %360 = vmatpush.msra.mxu2 %v237_v48  ;;  %v310_v17 = vld [vmem:[#allocation9 + $0x308] sm:$0xff]  ;;  %v315_v43 = vld [vmem:[#allocation9 + $0x330] sm:$0xff] }
  0x35   :  { %v113_v50 = vld [vmem:[#allocation6] sm:$0xff]  ;;  %v114_v51 = vld [vmem:[#allocation6 + $0x8] sm:$0xff]  ;;  %165 = vmatpush.msra.mxu0 %v115_v46  ;;  %188 = vmatpush.msra.mxu1 %v116_v47  ;;  %v247_v46 = vld [vmem:[#allocation9 + $0x110] sm:$0xff] }
  0x36   :  { %383 = vmatpush.msra.mxu3 %v301_v49  ;;  %v233_v55 = vld [vmem:[#allocation9 + $0xa0] sm:$0xff]  ;;  %v242_v20 = vld [vmem:[#allocation9 + $0xe8] sm:$0xff]  ;;  %v311_v47 = vld [vmem:[#allocation9 + $0x310] sm:$0xff] }
  0x37   :  { %166 = vmatpush.msra.mxu0 %v113_v50  ;;  %189 = vmatpush.msra.mxu1 %v114_v51  ;;  %v297_v56 = vld [vmem:[#allocation9 + $0x2a0] sm:$0xff]  ;;  %v306_v21 = vld [vmem:[#allocation9 + $0x2e8] sm:$0xff]  ;;  %v824_v50 = vld [vmem:[#allocation9 + $0x1f8] sm:$0xff] }
  0x38   :  { %167 = vmatmul.f32.vlgmr.msra.gmra.mxu0 %v111_v52  ;;  %190 = vmatmul.f32.vlgmr.msra.gmra.mxu1 %v111_v52  ;;  %v229_v59 = vld [vmem:[#allocation9 + $0x80] sm:$0xff]  ;;  %v238_v24 = vld [vmem:[#allocation9 + $0xc8] sm:$0xff]  ;;  %v826_v51 = vld [vmem:[#allocation9 + $0x3f8] sm:$0xff] }
  0x39   :  { %397 = vmatpush.msrb.mxu0 %v274_v53  ;;  %420 = vmatpush.msrb.mxu1 %v338_v54  ;;  %v293_v60 = vld [vmem:[#allocation9 + $0x280] sm:$0xff]  ;;  %v302_v25 = vld [vmem:[#allocation9 + $0x2c8] sm:$0xff]  ;;  %v243_v52 = vld [vmem:[#allocation9 + $0xf0] sm:$0xff] }
  0x3a   :  { %361 = vmatpush.msra.mxu2 %v233_v55  ;;  %384 = vmatpush.msra.mxu3 %v297_v56  ;;  %v225_v63 = vld [vmem:[#allocation9 + $0x60] sm:$0xff]  ;;  %v234_v28 = vld [vmem:[#allocation9 + $0xa8] sm:$0xff]  ;;  %v307_v53 = vld [vmem:[#allocation9 + $0x2f0] sm:$0xff] }
  0x3b   :  { %398 = vmatpush.msrb.mxu0 %v270_v57  ;;  %421 = vmatpush.msrb.mxu1 %v334_v58  ;;  %v289_v0 = vld [vmem:[#allocation9 + $0x260] sm:$0xff]  ;;  %v298_v29 = vld [vmem:[#allocation9 + $0x2a8] sm:$0xff]  ;;  %v828_v54 = vld [vmem:[#allocation9 + $0x1d8] sm:$0xff] }
  0x3c   :  { %362 = vmatpush.msra.mxu2 %v229_v59  ;;  %385 = vmatpush.msra.mxu3 %v293_v60  ;;  %v221_v6 = vld [vmem:[#allocation9 + $0x40] sm:$0xff]  ;;  %v230_v32 = vld [vmem:[#allocation9 + $0x88] sm:$0xff]  ;;  %v830_v55 = vld [vmem:[#allocation9 + $0x3d8] sm:$0xff] }
  0x3d   :  { %399 = vmatpush.msrb.mxu0 %v266_v61  ;;  %422 = vmatpush.msrb.mxu1 %v330_v62  ;;  %v285_v7 = vld [vmem:[#allocation9 + $0x240] sm:$0xff]  ;;  %v294_v33 = vld [vmem:[#allocation9 + $0x288] sm:$0xff]  ;;  %v239_v56 = vld [vmem:[#allocation9 + $0xd0] sm:$0xff] }
  0x3e   :  { %363 = vmatpush.msra.mxu2 %v225_v63  ;;  %386 = vmatpush.msra.mxu3 %v289_v0  ;;  %v217_v10 = vld [vmem:[#allocation9 + $0x20] sm:$0xff]  ;;  %v226_v36 = vld [vmem:[#allocation9 + $0x68] sm:$0xff]  ;;  %v303_v57 = vld [vmem:[#allocation9 + $0x2d0] sm:$0xff] }
  0x3f   :  { %400 = vmatpush.msrb.mxu0 %v262_v1  ;;  %423 = vmatpush.msrb.mxu1 %v326_v2  ;;  %v281_v11 = vld [vmem:[#allocation9 + $0x220] sm:$0xff]  ;;  %v290_v37 = vld [vmem:[#allocation9 + $0x268] sm:$0xff]  ;;  %v834_v58 = vld [vmem:[#allocation9 + $0x1b8] sm:$0xff] }
  0x40   :  { %170 = vmatmul.f32.gmra.mxu0 %v112_v3  ;;  %193 = vmatmul.f32.gmra.mxu1 %v112_v3  ;;  %v213_v14 = vld [vmem:[#allocation9] sm:$0xff]  ;;  %v222_v40 = vld [vmem:[#allocation9 + $0x48] sm:$0xff]  ;;  %v836_v59 = vld [vmem:[#allocation9 + $0x3b8] sm:$0xff] }
  0x41   :  { %401 = vmatpush.msrb.mxu0 %v258_v4  ;;  %424 = vmatpush.msrb.mxu1 %v322_v5  ;;  %v277_v15 = vld [vmem:[#allocation9 + $0x200] sm:$0xff]  ;;  %v286_v41 = vld [vmem:[#allocation9 + $0x248] sm:$0xff]  ;;  %v235_v60 = vld [vmem:[#allocation9 + $0xb0] sm:$0xff] }
  0x42   :  { %364 = vmatpush.msra.mxu2 %v221_v6  ;;  %387 = vmatpush.msra.mxu3 %v285_v7  ;;  %v218_v44 = vld [vmem:[#allocation9 + $0x28] sm:$0xff]  ;;  %v299_v61 = vld [vmem:[#allocation9 + $0x2b0] sm:$0xff]  ;;  %v840_v62 = vld [vmem:[#allocation9 + $0x198] sm:$0xff] }
  0x43   :  { %402 = vmatpush.msrb.mxu0 %v254_v8  ;;  %425 = vmatpush.msrb.mxu1 %v318_v9  ;;  %v282_v45 = vld [vmem:[#allocation9 + $0x228] sm:$0xff]  ;;  %v842_v63 = vld [vmem:[#allocation9 + $0x398] sm:$0xff]  ;;  %v231_v0 = vld [vmem:[#allocation9 + $0x90] sm:$0xff] }
  0x44   :  { %365 = vmatpush.msra.mxu2 %v217_v10  ;;  %388 = vmatpush.msra.mxu3 %v281_v11  ;;  %v214_v48 = vld [vmem:[#allocation9 + $0x8] sm:$0xff]  ;;  %v295_v1 = vld [vmem:[#allocation9 + $0x290] sm:$0xff]  ;;  %v848_v2 = vld [vmem:[#allocation9 + $0x178] sm:$0xff] }
  0x45   :  { %403 = vmatpush.msrb.mxu0 %v250_v12  ;;  %426 = vmatpush.msrb.mxu1 %v314_v13  ;;  %v278_v49 = vld [vmem:[#allocation9 + $0x208] sm:$0xff]  ;;  %v850_v3 = vld [vmem:[#allocation9 + $0x378] sm:$0xff]  ;;  %v227_v4 = vld [vmem:[#allocation9 + $0x70] sm:$0xff] }
  0x46   :  { %366 = vmatpush.msra.mxu2 %v213_v14  ;;  %389 = vmatpush.msra.mxu3 %v277_v15  ;;  %v291_v5 = vld [vmem:[#allocation9 + $0x270] sm:$0xff]  ;;  %v854_v6 = vld [vmem:[#allocation9 + $0x158] sm:$0xff] }
  0x47   :  { %404 = vmatpush.msrb.mxu0 %v246_v16  ;;  %427 = vmatpush.msrb.mxu1 %v310_v17  ;;  %v856_v7 = vld [vmem:[#allocation9 + $0x358] sm:$0xff]  ;;  %v223_v8 = vld [vmem:[#allocation9 + $0x50] sm:$0xff] }
  0x48   :  { %443 = vmatpush.msrb.mxu2 %v275_v18  ;;  %466 = vmatpush.msrb.mxu3 %v339_v19  ;;  %v287_v9 = vld [vmem:[#allocation9 + $0x250] sm:$0xff]  ;;  %v860_v10 = vld [vmem:[#allocation9 + $0x138] sm:$0xff] }
  0x49   :  { %405 = vmatpush.msrb.mxu0 %v242_v20  ;;  %428 = vmatpush.msrb.mxu1 %v306_v21  ;;  %v862_v11 = vld [vmem:[#allocation9 + $0x338] sm:$0xff]  ;;  %v219_v12 = vld [vmem:[#allocation9 + $0x30] sm:$0xff] }
  0x4a   :  { %444 = vmatpush.msrb.mxu2 %v271_v22  ;;  %467 = vmatpush.msrb.mxu3 %v335_v23  ;;  %v283_v13 = vld [vmem:[#allocation9 + $0x230] sm:$0xff]  ;;  %v866_v14 = vld [vmem:[#allocation9 + $0x118] sm:$0xff] }
  0x4b   :  { %406 = vmatpush.msrb.mxu0 %v238_v24  ;;  %429 = vmatpush.msrb.mxu1 %v302_v25  ;;  %v868_v15 = vld [vmem:[#allocation9 + $0x318] sm:$0xff]  ;;  %v215_v16 = vld [vmem:[#allocation9 + $0x10] sm:$0xff] }
  0x4c   :  { %445 = vmatpush.msrb.mxu2 %v267_v26  ;;  %468 = vmatpush.msrb.mxu3 %v331_v27  ;;  %v279_v17 = vld [vmem:[#allocation9 + $0x210] sm:$0xff]  ;;  %v872_v18 = vld [vmem:[#allocation9 + $0xf8] sm:$0xff] }
  0x4d   :  { %407 = vmatpush.msrb.mxu0 %v234_v28  ;;  %430 = vmatpush.msrb.mxu1 %v298_v29  ;;  %v874_v19 = vld [vmem:[#allocation9 + $0x2f8] sm:$0xff] }
  0x4e   :  { %446 = vmatpush.msrb.mxu2 %v263_v30  ;;  %469 = vmatpush.msrb.mxu3 %v327_v31  ;;  %v878_v20 = vld [vmem:[#allocation9 + $0xd8] sm:$0xff] }
  0x4f   :  { %408 = vmatpush.msrb.mxu0 %v230_v32  ;;  %431 = vmatpush.msrb.mxu1 %v294_v33  ;;  %v880_v21 = vld [vmem:[#allocation9 + $0x2d8] sm:$0xff] }
  0x50   :  { %447 = vmatpush.msrb.mxu2 %v259_v34  ;;  %470 = vmatpush.msrb.mxu3 %v323_v35  ;;  %v884_v22 = vld [vmem:[#allocation9 + $0xb8] sm:$0xff] }
  0x51   :  { %409 = vmatpush.msrb.mxu0 %v226_v36  ;;  %432 = vmatpush.msrb.mxu1 %v290_v37  ;;  %v886_v23 = vld [vmem:[#allocation9 + $0x2b8] sm:$0xff] }
  0x52   :  { %448 = vmatpush.msrb.mxu2 %v255_v38  ;;  %471 = vmatpush.msrb.mxu3 %v319_v39  ;;  %v890_v24 = vld [vmem:[#allocation9 + $0x98] sm:$0xff] }
  0x53   :  { %410 = vmatpush.msrb.mxu0 %v222_v40  ;;  %433 = vmatpush.msrb.mxu1 %v286_v41  ;;  %v892_v25 = vld [vmem:[#allocation9 + $0x298] sm:$0xff] }
  0x54   :  { %449 = vmatpush.msrb.mxu2 %v251_v42  ;;  %472 = vmatpush.msrb.mxu3 %v315_v43  ;;  %v896_v26 = vld [vmem:[#allocation9 + $0x78] sm:$0xff] }
  0x55   :  { %411 = vmatpush.msrb.mxu0 %v218_v44  ;;  %434 = vmatpush.msrb.mxu1 %v282_v45  ;;  %v898_v27 = vld [vmem:[#allocation9 + $0x278] sm:$0xff] }
  0x56   :  { %450 = vmatpush.msrb.mxu2 %v247_v46  ;;  %473 = vmatpush.msrb.mxu3 %v311_v47  ;;  %v902_v28 = vld [vmem:[#allocation9 + $0x58] sm:$0xff] }
  0x57   :  { %412 = vmatpush.msrb.mxu0 %v214_v48  ;;  %435 = vmatpush.msrb.mxu1 %v278_v49  ;;  %v904_v29 = vld [vmem:[#allocation9 + $0x258] sm:$0xff] }
  0x58   :  { %451 = vmatpush.msrb.mxu2 %v243_v52  ;;  %474 = vmatpush.msrb.mxu3 %v307_v53  ;;  %v908_v30 = vld [vmem:[#allocation9 + $0x38] sm:$0xff] }
  0x59   :  { %489 = vmatpush.msra.mxu0 %v824_v50  ;;  %512 = vmatpush.msra.mxu1 %v826_v51  ;;  %v910_v31 = vld [vmem:[#allocation9 + $0x238] sm:$0xff] }
  0x5a   :  { %452 = vmatpush.msrb.mxu2 %v239_v56  ;;  %475 = vmatpush.msrb.mxu3 %v303_v57  ;;  %v914_v32 = vld [vmem:[#allocation9 + $0x18] sm:$0xff] }
  0x5b   :  { %490 = vmatpush.msra.mxu0 %v828_v54  ;;  %513 = vmatpush.msra.mxu1 %v830_v55  ;;  %v916_v33 = vld [vmem:[#allocation9 + $0x218] sm:$0xff] }
  0x5c   :  { %453 = vmatpush.msrb.mxu2 %v235_v60  ;;  %476 = vmatpush.msrb.mxu3 %v299_v61  ;;  %v145_v34 = vld [vmem:[#allocation8] sm:$0x3] }
  0x5d   :  { %491 = vmatpush.msra.mxu0 %v834_v58  ;;  %514 = vmatpush.msra.mxu1 %v836_v59  ;;  %v147_v35 = vperm.slane %v145_v34, 0  ;;  %v148_v36 = vperm.slane %v145_v34, 1 }
  0x5e   :  { %454 = vmatpush.msrb.mxu2 %v231_v0  ;;  %477 = vmatpush.msrb.mxu3 %v295_v1 }
  0x5f   :  { %492 = vmatpush.msra.mxu0 %v840_v62  ;;  %515 = vmatpush.msra.mxu1 %v842_v63 }
  0x60   :  { %455 = vmatpush.msrb.mxu2 %v227_v4  ;;  %478 = vmatpush.msrb.mxu3 %v291_v5 }
  0x61   :  { %493 = vmatpush.msra.mxu0 %v848_v2  ;;  %516 = vmatpush.msra.mxu1 %v850_v3 }
  0x62   :  { %456 = vmatpush.msrb.mxu2 %v223_v8  ;;  %479 = vmatpush.msrb.mxu3 %v287_v9 }
  0x63   :  { %494 = vmatpush.msra.mxu0 %v854_v6  ;;  %517 = vmatpush.msra.mxu1 %v856_v7 }
  0x64   :  { %457 = vmatpush.msrb.mxu2 %v219_v12  ;;  %480 = vmatpush.msrb.mxu3 %v283_v13 }
  0x65   :  { %495 = vmatpush.msra.mxu0 %v860_v10  ;;  %518 = vmatpush.msra.mxu1 %v862_v11 }
  0x66   :  { %458 = vmatpush.msrb.mxu2 %v215_v16  ;;  %481 = vmatpush.msrb.mxu3 %v279_v17 }
  0x67   :  { %496 = vmatpush.msra.mxu0 %v866_v14  ;;  %519 = vmatpush.msra.mxu1 %v868_v15 }
  0x69   :  { %497 = vmatpush.msra.mxu0 %v872_v18  ;;  %520 = vmatpush.msra.mxu1 %v874_v19 }
  0x6b   :  { %498 = vmatpush.msra.mxu0 %v878_v20  ;;  %521 = vmatpush.msra.mxu1 %v880_v21 }
  0x6d   :  { %499 = vmatpush.msra.mxu0 %v884_v22  ;;  %522 = vmatpush.msra.mxu1 %v886_v23 }
  0x6f   :  { %500 = vmatpush.msra.mxu0 %v890_v24  ;;  %523 = vmatpush.msra.mxu1 %v892_v25 }
  0x71   :  { %501 = vmatpush.msra.mxu0 %v896_v26  ;;  %524 = vmatpush.msra.mxu1 %v898_v27 }
  0x73   :  { %502 = vmatpush.msra.mxu0 %v902_v28  ;;  %525 = vmatpush.msra.mxu1 %v904_v29 }
  0x75   :  { %503 = vmatpush.msra.mxu0 %v908_v30  ;;  %526 = vmatpush.msra.mxu1 %v910_v31 }
  0x77   :  { %504 = vmatpush.msra.mxu0 %v914_v32  ;;  %527 = vmatpush.msra.mxu1 %v916_v33 }
  0xb5   :  { %v168_v37 = vpop.f32.mrf.mxu0  ;;  %v191_v38 = vpop.f32.mrf.mxu1 }
  0xb6   :  { %v169_v39 = vadd.f32 %v168_v37, %v147_v35  ;;  %v192_v40 = vadd.f32 %v191_v38, %v148_v36 }
  0xb8   :  { %v197_v41 = vmul.f32 0.01, %v169_v39  ;;  %v198_v42 = vmul.f32 0.01, %v192_v40 }
  0xba   :  { %v201_v43 = vmax.f32 %v169_v39, %v197_v41  ;;  %v202_v44 = vmax.f32 %v192_v40, %v198_v42 }
  0xbc   :  { %367 = vmatmul.f32.vlgmr.msra.gmra.mxu2 %v201_v43  ;;  %390 = vmatmul.f32.vlgmr.msra.gmra.mxu3 %v202_v44 }
  0xbd   :  { %413 = vmatmul.f32.vlgmr.msrb.gmra.mxu0 %v201_v43  ;;  %436 = vmatmul.f32.vlgmr.msrb.gmra.mxu1 %v202_v44  ;;  %v171_v45 = vpop.f32.mrf.mxu0  ;;  %v194_v46 = vpop.f32.mrf.mxu1 }
  0xbe   :  { %v172_v47 = vadd.f32 %v171_v45, %v147_v35  ;;  %v195_v48 = vadd.f32 %v194_v46, %v148_v36  ;;  %568 = vmatpush.msra.mxu2 %v824_v50  ;;  %584 = vmatpush.msra.mxu3 %v826_v51  ;;  %v341_v50 = vld [vmem:[#allocation11] sm:$0xf] }
  0xbf   :  { %v344_v51 = vperm.slane %v341_v50, 1  ;;  %v345_v12 = vperm.slane %v341_v50, 2 }
  0xc0   :  { %v199_v49 = vmul.f32 0.01, %v172_v47  ;;  %v200_v52 = vmul.f32 0.01, %v195_v48  ;;  %569 = vmatpush.msra.mxu2 %v828_v54  ;;  %585 = vmatpush.msra.mxu3 %v830_v55 }
  0xc2   :  { %v203_v53 = vmax.f32 %v172_v47, %v199_v49  ;;  %v204_v56 = vmax.f32 %v195_v48, %v200_v52  ;;  %570 = vmatpush.msra.mxu2 %v834_v58  ;;  %586 = vmatpush.msra.mxu3 %v836_v59  ;;  %v343_v58 = vperm.slane %v341_v50, 0 }
  0xc4   :  { %571 = vmatpush.msra.mxu2 %v840_v62  ;;  %587 = vmatpush.msra.mxu3 %v842_v63 }
  0xc5   :  { %370 = vmatmul.f32.gmra.mxu2 %v203_v53  ;;  %393 = vmatmul.f32.gmra.mxu3 %v204_v56 }
  0xc6   :  { %416 = vmatmul.f32.gmra.mxu0 %v203_v53  ;;  %439 = vmatmul.f32.gmra.mxu1 %v204_v56 }
  0xc7   :  { %572 = vmatpush.msra.mxu2 %v848_v2  ;;  %588 = vmatpush.msra.mxu3 %v850_v3 }
  0xc9   :  { %573 = vmatpush.msra.mxu2 %v854_v6  ;;  %589 = vmatpush.msra.mxu3 %v856_v7  ;;  %v346_v7 = vperm.slane %v341_v50, 3 }
  0xcb   :  { %574 = vmatpush.msra.mxu2 %v860_v10  ;;  %590 = vmatpush.msra.mxu3 %v862_v11 }
  0xcd   :  { %575 = vmatpush.msra.mxu2 %v866_v14  ;;  %591 = vmatpush.msra.mxu3 %v868_v15 }
  0xce   :  { %459 = vmatmul.f32.vlgmr.msrb.gmra.mxu2 %v201_v43  ;;  %482 = vmatmul.f32.vlgmr.msrb.gmra.mxu3 %v202_v44 }
  0xcf   :  { %505 = vmatmul.f32.vlgmr.msra.gmra.mxu0 %v201_v43  ;;  %528 = vmatmul.f32.vlgmr.msra.gmra.mxu1 %v202_v44 }
  0xd0   :  { %576 = vmatpush.msra.mxu2 %v872_v18  ;;  %592 = vmatpush.msra.mxu3 %v874_v19 }
  0xd2   :  { %577 = vmatpush.msra.mxu2 %v878_v20  ;;  %593 = vmatpush.msra.mxu3 %v880_v21 }
  0xd4   :  { %578 = vmatpush.msra.mxu2 %v884_v22  ;;  %594 = vmatpush.msra.mxu3 %v886_v23 }
  0xd6   :  { %579 = vmatpush.msra.mxu2 %v890_v24  ;;  %595 = vmatpush.msra.mxu3 %v892_v25 }
  0xd7   :  { %462 = vmatmul.f32.gmra.mxu2 %v203_v53  ;;  %485 = vmatmul.f32.gmra.mxu3 %v204_v56 }
  0xd8   :  { %580 = vmatpush.msra.mxu2 %v896_v26  ;;  %596 = vmatpush.msra.mxu3 %v898_v27 }
  0xda   :  { %581 = vmatpush.msra.mxu2 %v902_v28  ;;  %597 = vmatpush.msra.mxu3 %v904_v29 }
  0xdc   :  { %582 = vmatpush.msra.mxu2 %v908_v30  ;;  %598 = vmatpush.msra.mxu3 %v910_v31 }
  0xde   :  { %583 = vmatpush.msra.mxu2 %v914_v32  ;;  %599 = vmatpush.msra.mxu3 %v916_v33 }
  0xdf   :  { %508 = vmatmul.f32.vlgmr.msra.gmra.mxu2 %v203_v53  ;;  %531 = vmatmul.f32.vlgmr.msra.gmra.mxu3 %v204_v56 }
 0x13a   :  { %v414_v54 = vpop.f32.mrf.mxu0  ;;  %v437_v55 = vpop.f32.mrf.mxu1 }
 0x13b   :  { %v415_v57 = vadd.f32 %v414_v54, %v344_v51 }
 0x13d   :  { %v438_v59 = vadd.f32 %v437_v55, %v415_v57 }
 0x13f   :  { %536 = vst [vmem:[#allocation12 + $0x8] sm:$0xff] %v438_v59  ;;  %v368_v60 = vpop.f32.mrf.mxu2  ;;  %v391_v61 = vpop.f32.mrf.mxu3 }
 0x140   :  { %v369_v62 = vadd.f32 %v368_v60, %v343_v58 }
 0x142   :  { %v392_v63 = vadd.f32 %v391_v61, %v369_v62 }
 0x143   :  { %v417_v0 = vpop.f32.mrf.mxu0  ;;  %v440_v2 = vpop.f32.mrf.mxu1 }
 0x144   :  { %535 = vst [vmem:[#allocation12] sm:$0xff] %v392_v63  ;;  %v418_v1 = vadd.f32 %v417_v0, %v344_v51 }
 0x146   :  { %v441_v3 = vadd.f32 %v440_v2, %v418_v1 }
 0x148   :  { %540 = vst [vmem:[#allocation12 + $0x28] sm:$0xff] %v441_v3  ;;  %v371_v4 = vpop.f32.mrf.mxu2  ;;  %v394_v5 = vpop.f32.mrf.mxu3 }
 0x149   :  { %v372_v6 = vadd.f32 %v371_v4, %v343_v58 }
 0x14b   :  { %v395_v8 = vadd.f32 %v394_v5, %v372_v6 }
 0x14c   :  { %v506_v9 = vpop.f32.mrf.mxu0  ;;  %v529_v11 = vpop.f32.mrf.mxu1 }
 0x14d   :  { %539 = vst [vmem:[#allocation12 + $0x20] sm:$0xff] %v395_v8  ;;  %v507_v10 = vadd.f32 %v506_v9, %v346_v7 }
 0x14f   :  { %v530_v13 = vadd.f32 %v529_v11, %v507_v10 }
 0x151   :  { %538 = vst [vmem:[#allocation12 + $0x18] sm:$0xff] %v530_v13  ;;  %v460_v14 = vpop.f32.mrf.mxu2  ;;  %v483_v15 = vpop.f32.mrf.mxu3 }
 0x152   :  { %v461_v16 = vadd.f32 %v460_v14, %v345_v12 }
 0x154   :  { %v484_v17 = vadd.f32 %v483_v15, %v461_v16 }
 0x156   :  { %537 = vst [vmem:[#allocation12 + $0x10] sm:$0xff] %v484_v17 }
 0x15a   :  { %v463_v18 = vpop.f32.mrf.mxu2  ;;  %v486_v19 = vpop.f32.mrf.mxu3 }
 0x15b   :  { %v464_v20 = vadd.f32 %v463_v18, %v345_v12 }
 0x15d   :  { %v487_v21 = vadd.f32 %v486_v19, %v464_v20 }
 0x15f   :  { %541 = vst [vmem:[#allocation12 + $0x30] sm:$0xff] %v487_v21 }
 0x162   :  { %v509_v22 = vpop.f32.mrf.mxu2  ;;  %v532_v24 = vpop.f32.mrf.mxu3 }
 0x163   :  { %v510_v23 = vadd.f32 %v509_v22, %v346_v7 }
 0x165   :  { %v533_v25 = vadd.f32 %v532_v24, %v510_v23 }
 0x167   :  { %542 = vst [vmem:[#allocation12 + $0x38] sm:$0xff] %v533_v25 }
 0x168   :  { %559 = dma.vmem_to_hbm [thread:$0]  %s552_s4, 1024, %s554_s23, [#allocation5], %s768_s30, %s768_s30, %s769_s6  }
 0x169   :  { %762 = dma.done.wait [#allocation5], 1024  }
 0x16a   :  { %763 = vsyncadd [#allocation5], 4294966272 }
 0x16b   :  { %564 = vsyncpa [#allocation4], 1 }
 0x16c   :  { %565 = vsyncpa [#allocation7], 1 }
 0x16d   :  { %566 = vsyncpa [#allocation10], 1 }
 0x16e   :  { %567 = vsyncpa [#allocation5], 1 }

</bundles_post_ra>
